<compile_context>
chip_gen: v5e
topology: v5e:2x2
jax: 0.10.0
libtpu: 0.0.40
codegen_flags: <defaults>
</compile_context>

<pallas_src>
import jax
import jax.numpy as jnp
from jax.experimental import pallas as pl
from jax.experimental.pallas import tpu as pltpu


# ----------------------------------------------------------------------------
# Fused kernel: one grid step == one batch element.
# ----------------------------------------------------------------------------
def _ftgan_local_atten_kernel(x_ref,           # (1, N, C)  f32, channels-last
                              wq_ref, bq_ref,  # (C, C8), (1, C8)
                              wk_ref, bk_ref,  # (C, C8), (1, C8)
                              wv_ref, bv_ref,  # (C, C),  (1, C)
                              gamma_ref,       # (1, 1)
                              wa_ref, ba_ref,  # (C, Hd), (1, Hd)   Hd = 100 -> 128
                              wc_ref,          # (1, Hd)
                              o_ref):          # (1, 1, C)
    f32, bf16 = jnp.float32, jnp.bfloat16

    x = x_ref[0]                                # (N, C) f32
    xb = x.astype(bf16)

    # ---- Self_Attn: 1x1 convs as bf16-in / f32-accumulate MXU matmuls ------
    q = jnp.dot(xb, wq_ref[...].astype(bf16), preferred_element_type=f32) + bq_ref[...]
    k = jnp.dot(xb, wk_ref[...].astype(bf16), preferred_element_type=f32) + bk_ref[...]
    v = jnp.dot(xb, wv_ref[...].astype(bf16), preferred_element_type=f32) + bv_ref[...]

    # energy[i, j] = <q_i, k_j>  (contract the C//8 head dim; no transpose mat.)
    e = jax.lax.dot_general(q.astype(bf16), k.astype(bf16),
                            (((1,), (1,)), ((), ())),
                            preferred_element_type=f32)            # (N, N)

    # softmax over j (f32); reciprocal goes to the EUP slot
    m = jnp.max(e, axis=-1, keepdims=True)
    p = jnp.exp(e - m)
    attn = p * pl.reciprocal(jnp.sum(p, axis=-1, keepdims=True), approx=True)

    # out[i, c] = sum_j attn[i, j] * v[j, c]
    o_sa = jnp.dot(attn.astype(bf16), v.astype(bf16),
                   preferred_element_type=f32)                     # (N, C)
    sa = gamma_ref[...] * o_sa + x                                 # (N, C) f32

    # ---- local attention pooling -------------------------------------------
    # h = tanh(sa @ Wa + ba); hidden padded 100 -> 128 with exact zeros.
    h = jnp.tanh(jnp.dot(sa.astype(bf16), wa_ref[...].astype(bf16),
                         preferred_element_type=f32) + ba_ref[...])  # (N, Hd)

    # context_vec (hidden -> 1, no bias): 1-column contraction on the VPU.
    s = jnp.sum(h * wc_ref[...], axis=-1, keepdims=True)           # (N, 1)

    # softmax over spatial positions (exact f32 division: weights sum to 1)
    sm = jnp.max(s, axis=0, keepdims=True)
    sp = jnp.exp(s - sm)
    amap = sp / jnp.sum(sp, axis=0, keepdims=True)                 # (N, 1)

    # weighted sum of the ORIGINAL style features over spatial -> (1, C)
    pooled = jnp.sum(x * amap, axis=0, keepdims=True)
    o_ref[...] = pooled.reshape(1, 1, -1).astype(o_ref.dtype)


# ----------------------------------------------------------------------------
# Wrapper: NCHW in, (B, C) out -- matches FTGAN_Local_Atten.forward.
# ----------------------------------------------------------------------------
@jax.jit
def ftgan_local_atten_forward(x_nchw, params):
    B, C, H, W = x_nchw.shape
    N = H * W
    C8 = params["wq"].shape[1]
    Hd = params["wa"].shape[1]

    # NCHW -> channels-last (B, H*W, C): lane dim = C for every matmul/store.
    x = jnp.transpose(x_nchw, (0, 2, 3, 1)).reshape(B, N, C)

    def const(*shape):  # VMEM-resident weight: same block for every grid step
        return pl.BlockSpec(shape, lambda b, _s=shape: (0,) * len(_s))

    out = pl.pallas_call(
        _ftgan_local_atten_kernel,
        out_shape=jax.ShapeDtypeStruct((B, 1, C), jnp.float32),
        grid=(B,),
        in_specs=[
            pl.BlockSpec((1, N, C), lambda b: (b, 0, 0)),
            const(C, C8), const(1, C8),
            const(C, C8), const(1, C8),
            const(C, C), const(1, C),
            const(1, 1),
            const(C, Hd), const(1, Hd),
            const(1, Hd),
        ],
        out_specs=pl.BlockSpec((1, 1, C), lambda b: (b, 0, 0)),
        compiler_params=pltpu.CompilerParams(
            dimension_semantics=("parallel",)),
    )(x, params["wq"], params["bq"], params["wk"], params["bk"],
      params["wv"], params["bv"], params["gamma"],
      params["wa"], params["ba"], params["wc"])

    return out.reshape(B, C)


# ----------------------------------------------------------------------------
# Pure-JAX f32 reference (same math, no Pallas) for a numerical sanity check.
# ----------------------------------------------------------------------------
def reference_forward(x_nchw, params):
    B, C, H, W = x_nchw.shape
    x = jnp.transpose(x_nchw, (0, 2, 3, 1)).reshape(B, H * W, C)
    q = x @ params["wq"] + params["bq"]
    k = x @ params["wk"] + params["bk"]
    v = x @ params["wv"] + params["bv"]
    e = jnp.einsum("bic,bjc->bij", q, k)
    attn = jax.nn.softmax(e, axis=-1)
    o = jnp.einsum("bij,bjc->bic", attn, v)
    sa = params["gamma"][0, 0] * o + x
    h = jnp.tanh(sa @ params["wa"] + params["ba"])
    s = jnp.einsum("bnh,h->bn", h, params["wc"][0])
    amap = jax.nn.softmax(s, axis=-1)[..., None]
    return jnp.sum(x * amap, axis=1)


# ----------------------------------------------------------------------------
# Deterministic synthetic parameters (kernel-friendly layouts).
# ----------------------------------------------------------------------------
def init_params(key, ngf=32, hidden=100, hidden_pad=128):
    C = ngf * 4
    C8 = C // 8
    ks = jax.random.split(key, 9)

    def mat(k, cin, cout, scale=0.05):
        return jax.random.normal(k, (cin, cout), jnp.float32) * scale

    def vec(k, n, scale=0.05):
        return jax.random.normal(k, (1, n), jnp.float32) * scale

    # Linear(C, 100) / Linear(100, 1) weights, zero-padded 100 -> 128 (exact).
    wa = jnp.zeros((C, hidden_pad), jnp.float32).at[:, :hidden].set(mat(ks[6], C, hidden))
    ba = jnp.zeros((1, hidden_pad), jnp.float32).at[:, :hidden].set(vec(ks[7], hidden))
    wc = jnp.zeros((1, hidden_pad), jnp.float32).at[:, :hidden].set(vec(ks[8], hidden, scale=0.2))

    return {
        "wq": mat(ks[0], C, C8), "bq": vec(ks[1], C8),
        "wk": mat(ks[2], C, C8), "bk": vec(ks[3], C8),
        "wv": mat(ks[4], C, C),  "bv": vec(ks[5], C),
        # PyTorch initializes gamma to 0 (identity Self_Attn); use a nonzero
        # value here so the full attention path is exercised numerically.
        "gamma": jnp.full((1, 1), 0.5, jnp.float32),
        "wa": wa, "ba": ba, "wc": wc,
    }


if __name__ == "__main__":
    ngf = 32                      # C = ngf*4 = 128 (lane-dense), C//8 = 16
    B, H, W = 2, 8, 8
    C = ngf * 4

    key = jax.random.PRNGKey(0)
    kx, kp = jax.random.split(key)
    x = jax.random.normal(kx, (B, C, H, W), jnp.float32)   # NCHW, like PyTorch
    params = init_params(kp, ngf)

    out = ftgan_local_atten_forward(x, params)
    out = jax.block_until_ready(out)

    assert out.shape == (B, C), out.shape
    assert bool(jnp.all(jnp.isfinite(out)))

    # Structural check: out[b, c] is a convex combination (softmax weights) of
    # x[b, c, :, :] over spatial, so it must lie within the per-(b, c) range.
    x_cl = jnp.transpose(x, (0, 2, 3, 1)).reshape(B, H * W, C)
    lo = jnp.min(x_cl, axis=1) - 1e-3
    hi = jnp.max(x_cl, axis=1) + 1e-3
    assert bool(jnp.all(out >= lo)) and bool(jnp.all(out <= hi))

    # Numerical check vs pure-JAX f32 reference (loose tol: bf16 MXU operands).
    ref = reference_forward(x, params)
    max_err = float(jnp.max(jnp.abs(out - ref)))
    assert max_err <= 5e-2, max_err

    print("KERNEL_OK")
</pallas_src>

<mosaic_0001>
module attributes {stable_mosaic.version = 11 : i64} {
  func.func @_ftgan_local_atten_kernel(%arg0: i32, %arg1: memref<1x64x128xf32, #tpu.memory_space<vmem>>, %arg2: memref<128x16xf32, #tpu.memory_space<vmem>>, %arg3: memref<1x16xf32, #tpu.memory_space<vmem>>, %arg4: memref<128x16xf32, #tpu.memory_space<vmem>>, %arg5: memref<1x16xf32, #tpu.memory_space<vmem>>, %arg6: memref<128x128xf32, #tpu.memory_space<vmem>>, %arg7: memref<1x128xf32, #tpu.memory_space<vmem>>, %arg8: memref<1x1xf32, #tpu.memory_space<vmem>>, %arg9: memref<128x128xf32, #tpu.memory_space<vmem>>, %arg10: memref<1x128xf32, #tpu.memory_space<vmem>>, %arg11: memref<1x128xf32, #tpu.memory_space<vmem>>, %arg12: memref<1x1x128xf32, #tpu.memory_space<vmem>>) attributes {dimension_semantics = [#tpu.dimension_semantics<parallel>], iteration_bounds = array<i64: 2>, scalar_prefetch = 0 : i64, scratch_operands = 0 : i64, tpu.core_type = #tpu.core_type<tc>, window_params = [{transform_indices = @transform_0, window_bounds = array<i64: 1, 64, 128>}, {pipeline_mode = #tpu.pipeline_mode<synchronous>, transform_indices = @transform_1, window_bounds = array<i64: 128, 16>}, {pipeline_mode = #tpu.pipeline_mode<synchronous>, transform_indices = @transform_2, window_bounds = array<i64: 1, 16>}, {pipeline_mode = #tpu.pipeline_mode<synchronous>, transform_indices = @transform_3, window_bounds = array<i64: 128, 16>}, {pipeline_mode = #tpu.pipeline_mode<synchronous>, transform_indices = @transform_4, window_bounds = array<i64: 1, 16>}, {pipeline_mode = #tpu.pipeline_mode<synchronous>, transform_indices = @transform_5, window_bounds = array<i64: 128, 128>}, {pipeline_mode = #tpu.pipeline_mode<synchronous>, transform_indices = @transform_6, window_bounds = array<i64: 1, 128>}, {pipeline_mode = #tpu.pipeline_mode<synchronous>, transform_indices = @transform_7, window_bounds = array<i64: 1, 1>}, {pipeline_mode = #tpu.pipeline_mode<synchronous>, transform_indices = @transform_8, window_bounds = array<i64: 128, 128>}, {pipeline_mode = #tpu.pipeline_mode<synchronous>, transform_indices = @transform_9, window_bounds = array<i64: 1, 128>}, {pipeline_mode = #tpu.pipeline_mode<synchronous>, transform_indices = @transform_10, window_bounds = array<i64: 1, 128>}, {transform_indices = @transform_11, window_bounds = array<i64: 1, 1, 128>}]} {
    %c0 = arith.constant 0 : index
    %c0_0 = arith.constant 0 : index
    %c0_1 = arith.constant 0 : index
    %0 = vector.load %arg1[%c0, %c0_0, %c0_1] : memref<1x64x128xf32, #tpu.memory_space<vmem>>, vector<1x64x128xf32>
    %1 = vector.shape_cast %0 : vector<1x64x128xf32> to vector<64x128xf32>
    %2 = arith.truncf %1 : vector<64x128xf32> to vector<64x128xbf16>
    %c0_2 = arith.constant 0 : index
    %c0_3 = arith.constant 0 : index
    %3 = vector.load %arg2[%c0_2, %c0_3] : memref<128x16xf32, #tpu.memory_space<vmem>>, vector<128x16xf32>
    %4 = arith.truncf %3 : vector<128x16xf32> to vector<128x16xbf16>
    %cst = arith.constant dense<0.000000e+00> : vector<64x16xf32>
    %5 = tpu.matmul %2, %4, %cst {dimension_numbers = #tpu.dot_dimension_numbers<[1], [0], [0], [1], [0, 0, 1, 1], [], []>} : vector<64x128xbf16>, vector<128x16xbf16>, vector<64x16xf32> -> vector<64x16xf32>
    %c0_4 = arith.constant 0 : index
    %c0_5 = arith.constant 0 : index
    %6 = vector.load %arg3[%c0_4, %c0_5] : memref<1x16xf32, #tpu.memory_space<vmem>>, vector<1x16xf32>
    %7 = vector.broadcast %6 : vector<1x16xf32> to vector<64x16xf32>
    %8 = arith.addf %5, %7 : vector<64x16xf32>
    %c0_6 = arith.constant 0 : index
    %c0_7 = arith.constant 0 : index
    %9 = vector.load %arg4[%c0_6, %c0_7] : memref<128x16xf32, #tpu.memory_space<vmem>>, vector<128x16xf32>
    %10 = arith.truncf %9 : vector<128x16xf32> to vector<128x16xbf16>
    %cst_8 = arith.constant dense<0.000000e+00> : vector<64x16xf32>
    %11 = tpu.matmul %2, %10, %cst_8 {dimension_numbers = #tpu.dot_dimension_numbers<[1], [0], [0], [1], [0, 0, 1, 1], [], []>} : vector<64x128xbf16>, vector<128x16xbf16>, vector<64x16xf32> -> vector<64x16xf32>
    %c0_9 = arith.constant 0 : index
    %c0_10 = arith.constant 0 : index
    %12 = vector.load %arg5[%c0_9, %c0_10] : memref<1x16xf32, #tpu.memory_space<vmem>>, vector<1x16xf32>
    %13 = vector.broadcast %12 : vector<1x16xf32> to vector<64x16xf32>
    %14 = arith.addf %11, %13 : vector<64x16xf32>
    %c0_11 = arith.constant 0 : index
    %c0_12 = arith.constant 0 : index
    %15 = vector.load %arg6[%c0_11, %c0_12] : memref<128x128xf32, #tpu.memory_space<vmem>>, vector<128x128xf32>
    %16 = arith.truncf %15 : vector<128x128xf32> to vector<128x128xbf16>
    %cst_13 = arith.constant dense<0.000000e+00> : vector<64x128xf32>
    %17 = tpu.matmul %2, %16, %cst_13 {dimension_numbers = #tpu.dot_dimension_numbers<[1], [0], [0], [1], [0, 0, 1, 1], [], []>} : vector<64x128xbf16>, vector<128x128xbf16>, vector<64x128xf32> -> vector<64x128xf32>
    %c0_14 = arith.constant 0 : index
    %c0_15 = arith.constant 0 : index
    %18 = vector.load %arg7[%c0_14, %c0_15] : memref<1x128xf32, #tpu.memory_space<vmem>>, vector<1x128xf32>
    %19 = vector.broadcast %18 : vector<1x128xf32> to vector<64x128xf32>
    %20 = arith.addf %17, %19 : vector<64x128xf32>
    %21 = arith.truncf %8 : vector<64x16xf32> to vector<64x16xbf16>
    %22 = arith.truncf %14 : vector<64x16xf32> to vector<64x16xbf16>
    %cst_16 = arith.constant dense<0.000000e+00> : vector<64x64xf32>
    %23 = tpu.matmul %21, %22, %cst_16 {dimension_numbers = #tpu.dot_dimension_numbers<[1], [1], [0], [0], [0, 0, 1, 0], [], []>} : vector<64x16xbf16>, vector<64x16xbf16>, vector<64x64xf32> -> vector<64x64xf32>
    %cst_17 = arith.constant dense<0xFF800000> : vector<64xf32>
    %24 = vector.multi_reduction <maximumf>, %23, %cst_17 [1] : vector<64x64xf32> to vector<64xf32>
    %25 = vector.shape_cast %24 : vector<64xf32> to vector<64x1xf32>
    %26 = vector.broadcast %25 : vector<64x1xf32> to vector<64x64xf32>
    %27 = arith.subf %23, %26 : vector<64x64xf32>
    %28 = math.exp %27 : vector<64x64xf32>
    %cst_18 = arith.constant dense<0.000000e+00> : vector<64xf32>
    %29 = vector.multi_reduction <add>, %28, %cst_18 [1] : vector<64x64xf32> to vector<64xf32>
    %30 = vector.shape_cast %29 : vector<64xf32> to vector<64x1xf32>
    %31 = tpu.reciprocal %30 {approx = true} : vector<64x1xf32> -> vector<64x1xf32>
    %32 = vector.broadcast %31 : vector<64x1xf32> to vector<64x64xf32>
    %33 = arith.mulf %28, %32 : vector<64x64xf32>
    %34 = arith.truncf %33 : vector<64x64xf32> to vector<64x64xbf16>
    %35 = arith.truncf %20 : vector<64x128xf32> to vector<64x128xbf16>
    %cst_19 = arith.constant dense<0.000000e+00> : vector<64x128xf32>
    %36 = tpu.matmul %34, %35, %cst_19 {dimension_numbers = #tpu.dot_dimension_numbers<[1], [0], [0], [1], [0, 0, 1, 1], [], []>} : vector<64x64xbf16>, vector<64x128xbf16>, vector<64x128xf32> -> vector<64x128xf32>
    %c0_20 = arith.constant 0 : index
    %c0_21 = arith.constant 0 : index
    %37 = vector.load %arg8[%c0_20, %c0_21] : memref<1x1xf32, #tpu.memory_space<vmem>>, vector<1x1xf32>
    %38 = vector.broadcast %37 : vector<1x1xf32> to vector<64x128xf32>
    %39 = arith.mulf %38, %36 : vector<64x128xf32>
    %40 = arith.addf %39, %1 : vector<64x128xf32>
    %41 = arith.truncf %40 : vector<64x128xf32> to vector<64x128xbf16>
    %c0_22 = arith.constant 0 : index
    %c0_23 = arith.constant 0 : index
    %42 = vector.load %arg9[%c0_22, %c0_23] : memref<128x128xf32, #tpu.memory_space<vmem>>, vector<128x128xf32>
    %43 = arith.truncf %42 : vector<128x128xf32> to vector<128x128xbf16>
    %cst_24 = arith.constant dense<0.000000e+00> : vector<64x128xf32>
    %44 = tpu.matmul %41, %43, %cst_24 {dimension_numbers = #tpu.dot_dimension_numbers<[1], [0], [0], [1], [0, 0, 1, 1], [], []>} : vector<64x128xbf16>, vector<128x128xbf16>, vector<64x128xf32> -> vector<64x128xf32>
    %c0_25 = arith.constant 0 : index
    %c0_26 = arith.constant 0 : index
    %45 = vector.load %arg10[%c0_25, %c0_26] : memref<1x128xf32, #tpu.memory_space<vmem>>, vector<1x128xf32>
    %46 = vector.broadcast %45 : vector<1x128xf32> to vector<64x128xf32>
    %47 = arith.addf %44, %46 : vector<64x128xf32>
    %48 = math.tanh %47 : vector<64x128xf32>
    %c0_27 = arith.constant 0 : index
    %c0_28 = arith.constant 0 : index
    %49 = vector.load %arg11[%c0_27, %c0_28] : memref<1x128xf32, #tpu.memory_space<vmem>>, vector<1x128xf32>
    %50 = vector.broadcast %49 : vector<1x128xf32> to vector<64x128xf32>
    %51 = arith.mulf %48, %50 : vector<64x128xf32>
    %cst_29 = arith.constant dense<0.000000e+00> : vector<64xf32>
    %52 = vector.multi_reduction <add>, %51, %cst_29 [1] : vector<64x128xf32> to vector<64xf32>
    %53 = vector.shape_cast %52 : vector<64xf32> to vector<64x1xf32>
    %cst_30 = arith.constant dense<0xFF800000> : vector<1xf32>
    %54 = vector.multi_reduction <maximumf>, %53, %cst_30 [0] : vector<64x1xf32> to vector<1xf32>
    %55 = vector.shape_cast %54 : vector<1xf32> to vector<1x1xf32>
    %56 = vector.broadcast %55 : vector<1x1xf32> to vector<64x1xf32>
    %57 = arith.subf %53, %56 : vector<64x1xf32>
    %58 = math.exp %57 : vector<64x1xf32>
    %cst_31 = arith.constant dense<0.000000e+00> : vector<1xf32>
    %59 = vector.multi_reduction <add>, %58, %cst_31 [0] : vector<64x1xf32> to vector<1xf32>
    %60 = vector.shape_cast %59 : vector<1xf32> to vector<1x1xf32>
    %61 = vector.broadcast %60 : vector<1x1xf32> to vector<64x1xf32>
    %62 = arith.divf %58, %61 : vector<64x1xf32>
    %63 = vector.broadcast %62 : vector<64x1xf32> to vector<64x128xf32>
    %64 = arith.mulf %1, %63 : vector<64x128xf32>
    %cst_32 = arith.constant dense<0.000000e+00> : vector<128xf32>
    %65 = vector.multi_reduction <add>, %64, %cst_32 [0] : vector<64x128xf32> to vector<128xf32>
    %66 = vector.shape_cast %65 : vector<128xf32> to vector<1x128xf32>
    %67 = vector.shape_cast %66 : vector<1x128xf32> to vector<1x1x128xf32>
    %c0_33 = arith.constant 0 : index
    %c0_34 = arith.constant 0 : index
    %c0_35 = arith.constant 0 : index
    %68 = vector.load %arg12[%c0_33, %c0_34, %c0_35] : memref<1x1x128xf32, #tpu.memory_space<vmem>>, vector<1x1x128xf32>
    tpu.vector_store %arg12[%c0_33, %c0_34, %c0_35], %67 {strides = array<i32>} : memref<1x1x128xf32, #tpu.memory_space<vmem>>, vector<1x1x128xf32>,
    return
  }
  func.func @transform_0(%arg0: i32) -> (i32, i32, i32) {
    %c0_i32 = arith.constant 0 : i32
    %c0_i32_0 = arith.constant 0 : i32
    %c0_i32_1 = arith.constant 0 : i32
    return %arg0, %c0_i32, %c0_i32_0 : i32, i32, i32
  }
  func.func @transform_1(%arg0: i32) -> (i32, i32) {
    %c0_i32 = arith.constant 0 : i32
    %c0_i32_0 = arith.constant 0 : i32
    %c0_i32_1 = arith.constant 0 : i32
    return %c0_i32, %c0_i32_0 : i32, i32
  }
  func.func @transform_2(%arg0: i32) -> (i32, i32) {
    %c0_i32 = arith.constant 0 : i32
    %c0_i32_0 = arith.constant 0 : i32
    %c0_i32_1 = arith.constant 0 : i32
    return %c0_i32, %c0_i32_0 : i32, i32
  }
  func.func @transform_3(%arg0: i32) -> (i32, i32) {
    %c0_i32 = arith.constant 0 : i32
    %c0_i32_0 = arith.constant 0 : i32
    %c0_i32_1 = arith.constant 0 : i32
    return %c0_i32, %c0_i32_0 : i32, i32
  }
  func.func @transform_4(%arg0: i32) -> (i32, i32) {
    %c0_i32 = arith.constant 0 : i32
    %c0_i32_0 = arith.constant 0 : i32
    %c0_i32_1 = arith.constant 0 : i32
    return %c0_i32, %c0_i32_0 : i32, i32
  }
  func.func @transform_5(%arg0: i32) -> (i32, i32) {
    %c0_i32 = arith.constant 0 : i32
    %c0_i32_0 = arith.constant 0 : i32
    %c0_i32_1 = arith.constant 0 : i32
    return %c0_i32, %c0_i32_0 : i32, i32
  }
  func.func @transform_6(%arg0: i32) -> (i32, i32) {
    %c0_i32 = arith.constant 0 : i32
    %c0_i32_0 = arith.constant 0 : i32
    %c0_i32_1 = arith.constant 0 : i32
    return %c0_i32, %c0_i32_0 : i32, i32
  }
  func.func @transform_7(%arg0: i32) -> (i32, i32) {
    %c0_i32 = arith.constant 0 : i32
    %c0_i32_0 = arith.constant 0 : i32
    %c0_i32_1 = arith.constant 0 : i32
    return %c0_i32, %c0_i32_0 : i32, i32
  }
  func.func @transform_8(%arg0: i32) -> (i32, i32) {
    %c0_i32 = arith.constant 0 : i32
    %c0_i32_0 = arith.constant 0 : i32
    %c0_i32_1 = arith.constant 0 : i32
    return %c0_i32, %c0_i32_0 : i32, i32
  }
  func.func @transform_9(%arg0: i32) -> (i32, i32) {
    %c0_i32 = arith.constant 0 : i32
    %c0_i32_0 = arith.constant 0 : i32
    %c0_i32_1 = arith.constant 0 : i32
    return %c0_i32, %c0_i32_0 : i32, i32
  }
  func.func @transform_10(%arg0: i32) -> (i32, i32) {
    %c0_i32 = arith.constant 0 : i32
    %c0_i32_0 = arith.constant 0 : i32
    %c0_i32_1 = arith.constant 0 : i32
    return %c0_i32, %c0_i32_0 : i32, i32
  }
  func.func @transform_11(%arg0: i32) -> (i32, i32, i32) {
    %c0_i32 = arith.constant 0 : i32
    %c0_i32_0 = arith.constant 0 : i32
    %c0_i32_1 = arith.constant 0 : i32
    return %arg0, %c0_i32, %c0_i32_0 : i32, i32, i32
  }
}

</mosaic_0001>

<bundles_post_ra>
// kernel: ftgan_local_atten_forward.1
= control target key start
LH: loop header
LB: loop body
LE: loop exit
PB: predicated region body
PF: predicated region fallthrough
CT: control target
= control target key end

     0   :  { %s1796_s0 = inlined_call_operand.vmem [shape: f32[2,64,128], index: 0, kind: input, shape index: {}]   ;;  %s1797_s1 = inlined_call_operand.vmem [shape: f32[128,16], index: 1, kind: input, shape index: {}]   ;;  %s1798_s2 = inlined_call_operand.vmem [shape: f32[1,16], index: 2, kind: input, shape index: {}]   ;;  %s1799_s3 = inlined_call_operand.vmem [shape: f32[128,16], index: 3, kind: input, shape index: {}]   ;;  %s1800_s4 = inlined_call_operand.vmem [shape: f32[1,16], index: 4, kind: input, shape index: {}]   ;;  %s1801_s5 = inlined_call_operand.vmem [shape: f32[128,128], index: 5, kind: input, shape index: {}]   ;;  %s1802_s6 = inlined_call_operand.vmem [shape: f32[1,128], index: 6, kind: input, shape index: {}]   ;;  %s1803_s7 = inlined_call_operand.<no memory space> [shape: f32[1,1], index: 7, kind: input, shape index: {}]   ;;  %s1804_s8 = inlined_call_operand.hbm [shape: f32[128,128], index: 8, kind: input, shape index: {}]   ;;  %s1805_s9 = inlined_call_operand.vmem [shape: f32[1,128], index: 9, kind: input, shape index: {}]   ;;  %s1806_s10 = inlined_call_operand.vmem [shape: f32[1,128], index: 10, kind: input, shape index: {}]   ;;  %s1807_s11 = inlined_call_operand.hbm [shape: f32[2,1,128], index: 11, kind: output, shape index: {}]  }
   0x1   :  { %1808 = sst [smem:[#allocation9_spill]] %s1804_s8  ;;  %v16_v0 = vstv %s1803_s7 }
   0x2   :  { %17 = vst [vmem:[#allocation2] sm:$0x1] %v16_v0 }
   0x3   :  { %18 = vsyncpa [#allocation4], 0 }
   0x4   :  { %19 = vsyncpa [#allocation5], 0 }
   0x5   :  { %21 = vsyncpa [#allocation5 + $0x1], 0  ;;  %s1408_s19 = smov 0   ;;  %s1410_s20 = smov 0  }
   0x6   :  { %s1412_s21 = smov 0   ;;  %s1414_s22 = smov 0  }
   0x7 LB: > { %s1429_s7 = sadd.s32 4294967295, %s1339_s22   ;;  %s1081_s23 = sadd.s32 4294967294, %s1339_s22   ;;  %s1339_s22 = sphi %s1414_s22, %s1815_s22   ;;  %s1335_s21 = sphi %s1412_s21, %s1814_s21   ;;  %s1331_s20 = sphi %s1410_s20, %s1813_s20   ;;  %s1327_s19 = sphi %s1408_s19, %s1812_s19  }
   0x8   : > { %s1433_s24 = sadd.s32 1, %s1339_s22   ;;  %s270_s25 = sadd.s32 1, %s1335_s21 }
   0x9   : > { %s267_s26 = ssub.s32 %s1339_s22, %s1433_s24  ;;  %p280_p0 = scmp.ne.s32.totalorder %s1335_s21, %s1331_s20 }
   0xa   : > { %p268_p1 = scmp.eq.s32.totalorder %s267_s26, 0  ;;  %p281_p2 = scmp.eq.s32.totalorder %s1429_s7, 1 }
   0xb   : > { %p286_p3 = scmp.ne.s32.totalorder %s1331_s20, %s1327_s19  ;;  %p287_p4 = scmp.eq.s32.totalorder %s1081_s23, 1 }
   0xc   : > { %s1444_s27 = scalar_select %p268_p1, %s1335_s21, %s270_s25  }
   0xd   : > { %p1446_p5 = por %p281_p2, %p280_p0  ;;  %p1450_p6 = por %p287_p4, %p286_p3 }
   0xe   : > { %p1082_p7 = scmp.ge.s32.totalorder %s1339_s22, 1  ;;  %p294_p8 = scmp.lt.s32.totalorder %s1339_s22, 3 }
   0xf   : > { %p1130_p9 = scmp.eq.s32.totalorder %s1429_s7, 0  ;;  %s1811_s8 = sld [smem:[#allocation9_spill]] }
  0x10   : > { %p295_p10 = pnand %p1082_p7, %p294_p8  ;;  %s1341_s14 = smov [#allocation3]  }
  0x11   : > { %s328_s15 = sshll.u32 %s1341_s14, 4  ;;  %s1342_s16 = smov 128   ;;  %s329_s15 = int_to_ptr.vmem [resolvable:$true] %s328_s15 }
  0x12   : > { %p1122_p11 = pneg %p295_p10  ;;  %s1343_s17 = smov 8  }
  0x13   : > { %358 = sbr.rel (%p295_p10) target bundleno = 1202 (0x4b2), region = 64 }
  0x14   : > { %p1123_p12 = pnand %p1130_p9, %p1122_p11 }
  0x15   : > { %s326_s13 = sshll.u32 %s1811_s8, 4  ;;  %s327_s13 = int_to_ptr.hbm [resolvable:$true] %s326_s13 }
  0x16   : > { %1125 = dma.hbm_to_vmem [thread:$0]  (!%p1123_p12), %s327_s13, 2048, %s329_s15, [#allocation4], %s1342_s16, %s1342_s16, %s1343_s17  }
  0x18   : > { %1318 = dma.done.wait (%p1130_p9), [#allocation4], 2048  }
  0x19   : > { %1320 = vsyncadd (%p1130_p9), [#allocation4], 4294965248  ;;  %v487_v1 = vld [vmem:[%s1799_s3 + $0x70] sm:$0xff]  ;;  %v488_v2 = vld [vmem:[%s1799_s3 + $0x78] sm:$0xff]  ;;  %p398_p13 = scmp.lt.s32.totalorder %s1429_s7, 1  ;;  %vm595_vm0 = vcmask 130048   ;;  %s1010_s17 = scalar_lea.hbm %s1807_s11, %s1429_s7 }
  0x1a   : > { %v485_v3 = vld [vmem:[%s1799_s3 + $0x60] sm:$0xff]  ;;  %v496_v4 = vpack.c.bf16 %v488_v2, %v487_v1  ;;  %v486_v5 = vld [vmem:[%s1799_s3 + $0x68] sm:$0xff]  ;;  %v483_v7 = vld [vmem:[%s1799_s3 + $0x50] sm:$0xff]  ;;  %vm649_vm1 = vcmask 523264   ;;  %s396_s15 = sand.u32 1, %s1331_s20  }
  0x1b   : > { %v495_v6 = vpack.c.bf16 %v486_v5, %v485_v3  ;;  %v484_v8 = vld [vmem:[%s1799_s3 + $0x58] sm:$0xff]  ;;  %v430_v9 = vld [vmem:[%s1797_s1 + $0x70] sm:$0xff]  ;;  %v481_v11 = vld [vmem:[%s1799_s3 + $0x40] sm:$0xff]  ;;  %s399_s13 = scalar_select %p398_p13, %s1429_s7, 1 }
  0x1c   : > { %1108 = vmatpush.bf16.msra.mxu3 %v496_v4  ;;  %501 = vmatpush.bf16.msra.mxu1 %v496_v4  ;;  %v494_v10 = vpack.c.bf16 %v484_v8, %v483_v7  ;;  %v482_v12 = vld [vmem:[%s1799_s3 + $0x48] sm:$0xff]  ;;  %v431_v13 = vld [vmem:[%s1797_s1 + $0x78] sm:$0xff]  ;;  %v479_v16 = vld [vmem:[%s1799_s3 + $0x30] sm:$0xff]  ;;  %s397_s18 = scalar_lea.vmem [#allocation6], %s396_s15  ;;  %s1002_s25 = scalar_lea.sflag [#allocation5], %s396_s15 }
  0x1d   : > { %v439_v14 = vpack.c.bf16 %v431_v13, %v430_v9  ;;  %v493_v15 = vpack.c.bf16 %v482_v12, %v481_v11  ;;  %v480_v17 = vld [vmem:[%s1799_s3 + $0x38] sm:$0xff]  ;;  %v477_v19 = vld [vmem:[%s1799_s3 + $0x20] sm:$0xff]  ;;  %v478_v20 = vld [vmem:[%s1799_s3 + $0x28] sm:$0xff]  ;;  %s1099_s16 = sshll.u32 %s399_s13, 6  ;;  %s1012_s23 = sshll.u32 %s397_s18, 4  ;;  %s1013_s23 = int_to_ptr.vmem [resolvable:$true] %s1012_s23 }
  0x1e   : > { %v492_v18 = vpack.c.bf16 %v480_v17, %v479_v16  ;;  %v428_v21 = vld [vmem:[%s1797_s1 + $0x60] sm:$0xff]  ;;  %v429_v22 = vld [vmem:[%s1797_s1 + $0x68] sm:$0xff]  ;;  %v426_v23 = vld [vmem:[%s1797_s1 + $0x50] sm:$0xff]  ;;  %v491_v24 = vpack.c.bf16 %v478_v20, %v477_v19  ;;  %s1537_s30 = scalar_lea.vmem %s1796_s0, %s1099_s16  ;;  %s1293_s7 = scalar_lea.hbm %s1807_s11, 2 }
  0x1f   : > { %444 = vmatpush.bf16.msra.mxu0 %v439_v14  ;;  %1100 = vmatpush.bf16.msra.mxu2 %v439_v14  ;;  %v438_v25 = vpack.c.bf16 %v429_v22, %v428_v21  ;;  %v427_v26 = vld [vmem:[%s1797_s1 + $0x58] sm:$0xff]  ;;  %v475_v27 = vld [vmem:[%s1799_s3 + $0x10] sm:$0xff]  ;;  %v424_v30 = vld [vmem:[%s1797_s1 + $0x40] sm:$0xff] }
  0x20   : > { %1109 = vmatpush.bf16.msra.mxu3 %v495_v6  ;;  %502 = vmatpush.bf16.msra.mxu1 %v495_v6  ;;  %v476_v28 = vld [vmem:[%s1799_s3 + $0x18] sm:$0xff]  ;;  %v437_v29 = vpack.c.bf16 %v427_v26, %v426_v23  ;;  %v425_v31 = vld [vmem:[%s1797_s1 + $0x48] sm:$0xff]  ;;  %v473_v33 = vld [vmem:[%s1799_s3] sm:$0xff] }
  0x21   : > { %v490_v32 = vpack.c.bf16 %v476_v28, %v475_v27  ;;  %v474_v34 = vld [vmem:[%s1799_s3 + $0x8] sm:$0xff]  ;;  %v436_v35 = vpack.c.bf16 %v425_v31, %v424_v30  ;;  %v1546_v36 = vld [vmem:[%s1537_s30 + $0x20] sm:$0xff]  ;;  %v422_v37 = vld [vmem:[%s1797_s1 + $0x30] sm:$0xff] }
  0x22   : > { %v423_v38 = vld [vmem:[%s1797_s1 + $0x38] sm:$0xff]  ;;  %v489_v39 = vpack.c.bf16 %v474_v34, %v473_v33  ;;  %v1555_v40 = vld [vmem:[%s1537_s30 + $0x28] sm:$0xff]  ;;  %v1558_v41 = vld [vmem:[%s1537_s30] sm:$0xff] }
  0x23   : > { %445 = vmatpush.bf16.msra.mxu0 %v438_v25  ;;  %1101 = vmatpush.bf16.msra.mxu2 %v438_v25  ;;  %v1561_v42 = vld [vmem:[%s1537_s30 + $0x8] sm:$0xff]  ;;  %v435_v43 = vpack.c.bf16 %v423_v38, %v422_v37  ;;  %v1565_v44 = vpack.c.bf16 %v1555_v40, %v1546_v36  ;;  %v420_v46 = vld [vmem:[%s1797_s1 + $0x20] sm:$0xff]  ;;  %v418_v49 = vld [vmem:[%s1797_s1 + $0x10] sm:$0xff] }
  0x24   : > { %1110 = vmatpush.bf16.msra.mxu3 %v494_v10  ;;  %503 = vmatpush.bf16.msra.mxu1 %v494_v10  ;;  %v1569_v45 = vpack.c.bf16 %v1561_v42, %v1558_v41  ;;  %v421_v47 = vld [vmem:[%s1797_s1 + $0x28] sm:$0xff]  ;;  %v419_v50 = vld [vmem:[%s1797_s1 + $0x18] sm:$0xff]  ;;  %v416_v52 = vld [vmem:[%s1797_s1] sm:$0xff] }
  0x25   : > { %v434_v48 = vpack.c.bf16 %v421_v47, %v420_v46  ;;  %v433_v51 = vpack.c.bf16 %v419_v50, %v418_v49  ;;  %v417_v53 = vld [vmem:[%s1797_s1 + $0x8] sm:$0xff]  ;;  %v1592_v55 = vld [vmem:[%s1537_s30 + $0x30] sm:$0xff]  ;;  %v1595_v56 = vld [vmem:[%s1537_s30 + $0x38] sm:$0xff] }
  0x26   : > { %v432_v54 = vpack.c.bf16 %v417_v53, %v416_v52  ;;  %v1598_v57 = vld [vmem:[%s1537_s30 + $0x10] sm:$0xff]  ;;  %v1601_v58 = vld [vmem:[%s1537_s30 + $0x18] sm:$0xff]  ;;  %v1605_v59 = vpack.c.bf16 %v1595_v56, %v1592_v55  ;;  %v1171_v2 = vld [vmem:[%s1800_s4] ss:$0 sm:$0xff]  ;;  %s1014_s30 = sshll.u32 %s1010_s17, 4  ;;  %s1015_s30 = int_to_ptr.hbm [resolvable:$true] %s1014_s30 }
  0x27   : > { %446 = vmatpush.bf16.msra.mxu0 %v437_v29  ;;  %1102 = vmatpush.bf16.msra.mxu2 %v437_v29  ;;  %v1609_v60 = vpack.c.bf16 %v1601_v58, %v1598_v57  ;;  %v1172_v23 = vld [vmem:[%s1798_s2] ss:$0 sm:$0xff]  ;;  %v544_v34 = vld [vmem:[%s1801_s5 + $0x70] sm:$0xff]  ;;  %s1287_s26 = sshra.s32 %s1015_s30, 4  ;;  %s1288_s26 = int_to_ptr.hbm [resolvable:$true] %s1287_s26 }
  0x28   : > { %1111 = vmatpush.bf16.msra.mxu3 %v493_v15  ;;  %504 = vmatpush.bf16.msra.mxu1 %v493_v15  ;;  %v542_v37 = vld [vmem:[%s1801_s5 + $0x60] sm:$0xff]  ;;  %v540_v47 = vld [vmem:[%s1801_s5 + $0x50] sm:$0xff]  ;;  %s1289_s13 = scalar_lea.hbm %s1288_s26, 1  ;;  %p1294_p3 = scmp.lt.s32.totalorder %s1288_s26, %s1807_s11 }
  0x29   : > { %v538_v50 = vld [vmem:[%s1801_s5 + $0x40] sm:$0xff]  ;;  %p1290_p0 = scmp.ne.s32.totalorder %s1288_s26, %s1289_s13  ;;  %p1295_p4 = scmp.lt.s32.totalorder %s1293_s7, %s1289_s13 }
  0x2b   : > { %447 = vmatpush.bf16.msra.mxu0 %v436_v35  ;;  %1103 = vmatpush.bf16.msra.mxu2 %v436_v35  ;;  %v545_v35 = vld [vmem:[%s1801_s5 + $0x78] sm:$0xff]  ;;  %p1291_p1 = pnand %p1290_p0, %p1446_p5  ;;  %p1296_p7 = por %p1295_p4, %p1294_p3 }
  0x2c   : > { %1112 = vmatpush.bf16.msra.mxu3 %v492_v18  ;;  %505 = vmatpush.bf16.msra.mxu1 %v492_v18  ;;  %v553_v38 = vpack.c.bf16 %v545_v35, %v544_v34 }
  0x2d   : > { %p1292_p2 = pneg %p1291_p1 }
  0x2f   : > { %448 = vmatpush.bf16.msra.mxu0 %v435_v43  ;;  %1104 = vmatpush.bf16.msra.mxu2 %v435_v43  ;;  %p1297_p8 = pnand %p1296_p7, %p1292_p2 }
  0x30   : > { %1113 = vmatpush.bf16.msra.mxu3 %v491_v24  ;;  %506 = vmatpush.bf16.msra.mxu1 %v491_v24 }
  0x33   : > { %449 = vmatpush.bf16.msra.mxu0 %v434_v48  ;;  %1105 = vmatpush.bf16.msra.mxu2 %v434_v48  ;;  %v541_v48 = vld [vmem:[%s1801_s5 + $0x58] sm:$0xff] }
  0x34   : > { %1114 = vmatpush.bf16.msra.mxu3 %v490_v32  ;;  %507 = vmatpush.bf16.msra.mxu1 %v490_v32  ;;  %v551_v49 = vpack.c.bf16 %v541_v48, %v540_v47  ;;  %v1173_v48 = vld [vmem:[%s1802_s6] ss:$0 sm:$0xff] }
  0x37   : > { %450 = vmatpush.bf16.msra.mxu0 %v433_v51  ;;  %1106 = vmatpush.bf16.msra.mxu2 %v433_v51  ;;  %v539_v51 = vld [vmem:[%s1801_s5 + $0x48] sm:$0xff] }
  0x38   : > { %1115 = vmatpush.bf16.msra.mxu3 %v489_v39  ;;  %508 = vmatpush.bf16.msra.mxu1 %v489_v39  ;;  %v543_v39 = vld [vmem:[%s1801_s5 + $0x68] sm:$0xff] }
  0x39   : > { %v552_v46 = vpack.c.bf16 %v543_v39, %v542_v37 }
  0x3b   : > { %519 = vmatmul.bf16.vlgmr.msra.gmra.mxu3 %v1565_v44  ;;  %509 = vmatmul.bf16.vlgmr.msra.gmra.mxu1 %v1569_v45 }
  0x3c   : > { %451 = vmatpush.bf16.msra.mxu0 %v432_v54  ;;  %1107 = vmatpush.bf16.msra.mxu2 %v432_v54  ;;  %v550_v54 = vpack.c.bf16 %v539_v51, %v538_v50 }
  0x3f   : > { %452 = vmatmul.bf16.vlgmr.msra.gmra.mxu0 %v1569_v45  ;;  %462 = vmatmul.bf16.vlgmr.msra.gmra.mxu2 %v1565_v44 }
  0x40   : > { %558 = vmatpush.bf16.msrb.mxu2 %v553_v38 }
  0x44   : > { %559 = vmatpush.bf16.msrb.mxu2 %v552_v46 }
  0x48   : > { %560 = vmatpush.bf16.msrb.mxu2 %v551_v49 }
  0x4b   : > { %524 = vmatmul.bf16.gmra.mxu3 %v1605_v59  ;;  %514 = vmatmul.bf16.gmra.mxu1 %v1609_v60 }
  0x4c   : > { %561 = vmatpush.bf16.msrb.mxu2 %v550_v54 }
  0x4f   : > { %457 = vmatmul.bf16.gmra.mxu0 %v1609_v60  ;;  %467 = vmatmul.bf16.gmra.mxu2 %v1605_v59 }
  0xb8   : > { %v510_v62 = vpop.f32.mrf.mxu1 }
  0xb9   : > { %v511_v18 = vadd.f32 %v1171_v2, %v510_v62  ;;  %v537_v62 = vld [vmem:[%s1801_s5 + $0x38] sm:$0xff] }
  0xbc   : > { %v453_v16 = vpop.f32.mrf.mxu0 }
  0xbd   : > { %v454_v25 = vadd.f32 %v1172_v23, %v453_v16 }
  0xbe   : > { %v520_v61 = vpop.f32.mrf.mxu3 }
  0xbf   : > { %v521_v10 = vadd.f32 %v1171_v2, %v520_v61  ;;  %v536_v61 = vld [vmem:[%s1801_s5 + $0x30] sm:$0xff] }
  0xc0   : > { %v512_v0 = vpop.f32.mrf.mxu1 }
  0xc1   : > { %v513_v19 = vadd.f32 %v1171_v2, %v512_v0 }
  0xc2   : > { %v463_v30 = vpop.f32.mrf.mxu2 }
  0xc3   : > { %v591_v22 = vpack.c.bf16 %v513_v19, %v511_v18  ;;  %v464_v52 = vadd.f32 %v1172_v23, %v463_v30 }
  0xc4   : > { %v455_v21 = vpop.f32.mrf.mxu0 }
  0xc5   : > { %v609_v24 = vsel %vm595_vm0, %v591_v22, 0  ;;  %v456_v26 = vadd.f32 %v1172_v23, %v455_v21 }
  0xc6   : > { %v522_v63 = vpop.f32.mrf.mxu3 }
  0xc7   : > { %v523_v8 = vadd.f32 %v1171_v2, %v522_v63  ;;  %v587_v28 = vpack.c.bf16 %v456_v26, %v454_v25 }
  0xc8   : > { %v515_v3 = vpop.f32.mrf.mxu1 }
  0xc9   : > { %v593_v11 = vpack.c.bf16 %v523_v8, %v521_v10  ;;  %v516_v13 = vadd.f32 %v1171_v2, %v515_v3  ;;  %v535_v3 = vld [vmem:[%s1801_s5 + $0x28] sm:$0xff] }
  0xca   : > { %v465_v43 = vpop.f32.mrf.mxu2  ;;  %v531_v10 = vld [vmem:[%s1801_s5 + $0x8] sm:$0xff] }
  0xcb   : > { %v615_v15 = vsel %vm595_vm0, %v593_v11, 0  ;;  %v466_v53 = vadd.f32 %v1172_v23, %v465_v43 }
  0xcc   : > { %v458_v27 = vpop.f32.mrf.mxu0 }
  0xcd   : > { %v459_v31 = vadd.f32 %v1172_v23, %v458_v27  ;;  %v589_v0 = vpack.c.bf16 %v466_v53, %v464_v52 }
  0xce   : > { %v525_v1 = vpop.f32.mrf.mxu3 }
  0xcf   : > { %v526_v5 = vadd.f32 %v1171_v2, %v525_v1  ;;  %v549_v1 = vpack.c.bf16 %v537_v62, %v536_v61 }
  0xd0   : > { %v517_v12 = vpop.f32.mrf.mxu1 }
  0xd1   : > { %v518_v14 = vadd.f32 %v1171_v2, %v517_v12  ;;  %562 = vmatpush.bf16.msrb.mxu2 %v549_v1 }
  0xd2   : > { %v468_v63 = vpop.f32.mrf.mxu2 }
  0xd3   : > { %v592_v17 = vpack.c.bf16 %v518_v14, %v516_v13  ;;  %v469_v11 = vadd.f32 %v1172_v23, %v468_v63 }
  0xd4   : > { %v460_v29 = vpop.f32.mrf.mxu0 }
  0xd5   : > { %v612_v20 = vsel %vm595_vm0, %v592_v17, 0  ;;  %v461_v32 = vadd.f32 %v1172_v23, %v460_v29 }
  0xd6   : > { %v527_v4 = vpop.f32.mrf.mxu3 }
  0xd7   : > { %v528_v6 = vadd.f32 %v1171_v2, %v527_v4  ;;  %v588_v33 = vpack.c.bf16 %v461_v32, %v459_v31  ;;  %v534_v2 = vld [vmem:[%s1801_s5 + $0x20] sm:$0xff] }
  0xd8   : > { %v548_v4 = vpack.c.bf16 %v535_v3, %v534_v2 }
  0xd9   : > { %v594_v7 = vpack.c.bf16 %v528_v6, %v526_v5  ;;  %v532_v5 = vld [vmem:[%s1801_s5 + $0x10] sm:$0xff]  ;;  %v533_v6 = vld [vmem:[%s1801_s5 + $0x18] sm:$0xff] }
  0xda   : > { %563 = vmatpush.bf16.msrb.mxu2 %v548_v4  ;;  %v547_v8 = vpack.c.bf16 %v533_v6, %v532_v5 }
  0xdb   : > { %v618_v9 = vsel %vm595_vm0, %v594_v7, 0  ;;  %v470_v7 = vpop.f32.mrf.mxu2 }
  0xdc   : > { %624 = vmatpush.bf16.xpose.msrb.mxu3 %v618_v9  ;;  %v530_v9 = vld [vmem:[%s1801_s5] sm:$0xff]  ;;  %v471_v12 = vadd.f32 %v1172_v23, %v470_v7 }
  0xdd   : > { %v546_v13 = vpack.c.bf16 %v531_v10, %v530_v9 }
  0xde   : > { %564 = vmatpush.bf16.msrb.mxu2 %v547_v8  ;;  %v590_v14 = vpack.c.bf16 %v471_v12, %v469_v11 }
  0xe2   : > { %565 = vmatpush.bf16.msrb.mxu2 %v546_v13 }
  0xe4   : > { %625 = vmatpush.bf16.xpose.msrb.mxu3 %v615_v15 }
  0xe5   : > { %566 = vmatmul.bf16.vlgmr.msrb.gmra.mxu2 %v1569_v45 }
  0xec   : > { %626 = vmatpush.bf16.xpose.msrb.mxu3 %v612_v20 }
  0xf4   : > { %627 = vmatpush.bf16.xpose.msrb.mxu3 %v609_v24 }
  0xf5   : > { %571 = vmatmul.bf16.gmra.mxu2 %v1609_v60 }
  0xfb   : > { %1089 = vmatmul.msk.bf16.vlgmr.msrb.gmra.mxu3 %vm595_vm0, %v587_v28 }
 0x105   : > { %576 = vmatmul.bf16.gmra.mxu2 %v1565_v44 }
 0x10b   : > { %1090 = vmatmul.msk.bf16.gmra.mxu3 %vm595_vm0, %v588_v33 }
 0x115   : > { %581 = vmatmul.bf16.gmra.mxu2 %v1605_v59 }
 0x11b   : > { %1091 = vmatmul.msk.bf16.gmra.mxu3 %vm595_vm0, %v589_v0 }
 0x12b   : > { %1092 = vmatmul.msk.bf16.gmra.mxu3 %vm595_vm0, %v590_v14 }
 0x168   : > { %v567_v27 = vpop.f32.mrf.mxu2 }
 0x169   : > { %v568_v8 = vadd.f32 %v1173_v48, %v567_v27 }
 0x170   : > { %v569_v28 = vpop.f32.mrf.mxu2 }
 0x171   : > { %v570_v9 = vadd.f32 %v1173_v48, %v569_v28 }
 0x173   : > { %v742_v13 = vpack.c.bf16 %v570_v9, %v568_v8  ;;  %v823_v8 = vld [vmem:[#allocation3 + $0x48] sm:$0xff] }
 0x178   : > { %v572_v29 = vpop.f32.mrf.mxu2 }
 0x179   : > { %v573_v4 = vadd.f32 %v1173_v48, %v572_v29 }
 0x17e   : > { %v629_v15 = vpop.f32.mrf.mxu3 }
 0x17f   : > { %v650_v16 = vsel %vm649_vm1, %v629_v15, -inf }
 0x180   : > { %651 = vmax.xlane.f32.xlu0 %v650_v16  ;;  %v574_v30 = vpop.f32.mrf.mxu2 }
 0x181   : > { %v575_v5 = vadd.f32 %v1173_v48, %v574_v30 }
 0x183   : > { %v743_v12 = vpack.c.bf16 %v575_v5, %v573_v4  ;;  %v824_v4 = vld [vmem:[#allocation3 + $0x50] sm:$0xff]  ;;  %v825_v5 = vld [vmem:[#allocation3 + $0x58] sm:$0xff] }
 0x186   : > { %v631_v17 = vpop.f32.mrf.mxu3 }
 0x187   : > { %v653_v18 = vsel %vm649_vm1, %v631_v17, -inf }
 0x188   : > { %654 = vmax.xlane.f32.xlu0 %v653_v18  ;;  %v577_v31 = vpop.f32.mrf.mxu2 }
 0x189   : > { %v578_v62 = vadd.f32 %v1173_v48, %v577_v31 }
 0x18e   : > { %v634_v19 = vpop.f32.mrf.mxu3 }
 0x18f   : > { %v656_v20 = vsel %vm649_vm1, %v634_v19, -inf }
 0x190   : > { %657 = vmax.xlane.f32.xlu1 %v656_v20  ;;  %v579_v32 = vpop.f32.mrf.mxu2 }
 0x191   : > { %v580_v63 = vadd.f32 %v1173_v48, %v579_v32 }
 0x193   : > { %v744_v2 = vpack.c.bf16 %v580_v63, %v578_v62  ;;  %v828_v63 = vld [vmem:[#allocation3 + $0x70] sm:$0xff] }
 0x196   : > { %v636_v45 = vpop.f32.mrf.mxu3 }
 0x197   : > { %v659_v60 = vsel %vm649_vm1, %v636_v45, -inf }
 0x198   : > { %660 = vmax.xlane.f32.xlu1 %v659_v60  ;;  %v582_v37 = vpop.f32.mrf.mxu2 }
 0x199   : > { %v583_v52 = vadd.f32 %v1173_v48, %v582_v37 }
 0x19e   : > { %v1687_v44 = vpop.f32.mrf.mxu3 }
 0x19f   : > { %v662_v59 = vsel %vm649_vm1, %v1687_v44, -inf }
 0x1a0   : > { %663 = vmax.xlane.f32.xlu2 %v662_v59  ;;  %v584_v49 = vpop.f32.mrf.mxu2 }
 0x1a1   : > { %v585_v53 = vadd.f32 %v1173_v48, %v584_v49 }
 0x1a3   : > { %v745_v1 = vpack.c.bf16 %v585_v53, %v583_v52 }
 0x1a5   : > { %762 = vmatpush.bf16.msrb.mxu0 %v745_v1  ;;  %v827_v1 = vld [vmem:[#allocation3 + $0x68] sm:$0xff] }
 0x1a6   : > { %v1691_v21 = vpop.f32.mrf.mxu3 }
 0x1a7   : > { %v665_v22 = vsel %vm649_vm1, %v1691_v21, -inf }
 0x1a8   : > { %666 = vmax.xlane.f32.xlu2 %v665_v22 }
 0x1a9   : > { %763 = vmatpush.bf16.msrb.mxu0 %v744_v2 }
 0x1ad   : > { %764 = vmatpush.bf16.msrb.mxu0 %v743_v12 }
 0x1ae   : > { %v1695_v23 = vpop.f32.mrf.mxu3 }
 0x1af   : > { %v668_v24 = vsel %vm649_vm1, %v1695_v23, -inf }
 0x1b0   : > { %669 = vmax.xlane.f32.xlu0 %v668_v24 }
 0x1b1   : > { %765 = vmatpush.bf16.msrb.mxu0 %v742_v13 }
 0x1b6   : > { %v1699_v25 = vpop.f32.mrf.mxu3 }
 0x1b7   : > { %v671_v26 = vsel %vm649_vm1, %v1699_v25, -inf }
 0x1b8   : > { %672 = vmax.xlane.f32.xlu1 %v671_v26 }
 0x1f3   : > { %v652_v33 = vpop.xlane.xlu0 %651 }
 0x1f4   : > { %v674_v34 = vsub.f32 %v629_v15, %v652_v33  ;;  %v1174_v33 = vld [vmem:[#allocation2] ss:$0 sm:$0xff] }
 0x1f6   : > { %v682_v35 = vmul.f32 1.442695, %v674_v34  ;;  %v1344_v34 = vmov 0  }
 0x1f7   : > { %1169 = vset.pattern.permute.xlu1 %v1344_v34  ;;  %1170 = vset.pattern.permute.xlu0 %v1344_v34 }
 0x1f8   : > { %1177 = vpow2.f32 %v682_v35 }
 0x1fb   : > { %v655_v38 = vpop.xlane.xlu0 %654 }
 0x1fc   : > { %v675_v39 = vsub.f32 %v631_v17, %v655_v38 }
 0x1fe   : > { %v1703_v43 = vpop.eup %1177  ;;  %v684_v46 = vmul.f32 1.442695, %v675_v39 }
 0x1ff   : > { %v698_v47 = vsel %vm649_vm1, %v1703_v43, 0.0 }
 0x200   : > { %1179 = vpow2.f32 %v684_v46  ;;  %699 = vadd.xlane.f32.xlu2 %v698_v47 }
 0x203   : > { %v658_v50 = vpop.xlane.xlu1 %657 }
 0x204   : > { %v676_v51 = vsub.f32 %v634_v19, %v658_v50 }
 0x206   : > { %v1710_v54 = vpop.eup %1179  ;;  %v686_v61 = vmul.f32 1.442695, %v676_v51 }
 0x207   : > { %v701_v0 = vsel %vm649_vm1, %v1710_v54, 0.0 }
 0x208   : > { %1181 = vpow2.f32 %v686_v61  ;;  %702 = vadd.xlane.f32.xlu0 %v701_v0  ;;  %v826_v0 = vld [vmem:[#allocation3 + $0x60] sm:$0xff] }
 0x209   : > { %v836_v2 = vpack.c.bf16 %v827_v1, %v826_v0 }
 0x20b   : > { %v661_v3 = vpop.xlane.xlu1 %660 }
 0x20c   : > { %v677_v6 = vsub.f32 %v636_v45, %v661_v3 }
 0x20e   : > { %v1714_v7 = vpop.eup %1181  ;;  %v688_v10 = vmul.f32 1.442695, %v677_v6  ;;  %v835_v6 = vpack.c.bf16 %v825_v5, %v824_v4 }
 0x20f   : > { %v704_v11 = vsel %vm649_vm1, %v1714_v7, 0.0 }
 0x210   : > { %1183 = vpow2.f32 %v688_v10  ;;  %705 = vadd.xlane.f32.xlu1 %v704_v11 }
 0x213   : > { %v664_v14 = vpop.xlane.xlu2 %663 }
 0x214   : > { %v678_v15 = vsub.f32 %v1687_v44, %v664_v14 }
 0x216   : > { %v1184_v16 = vpop.eup %1183  ;;  %v690_v17 = vmul.f32 1.442695, %v678_v15 }
 0x217   : > { %v707_v18 = vsel %vm649_vm1, %v1184_v16, 0.0 }
 0x218   : > { %1185 = vpow2.f32 %v690_v17  ;;  %708 = vadd.xlane.f32.xlu2 %v707_v18 }
 0x21b   : > { %v667_v19 = vpop.xlane.xlu2 %666 }
 0x21c   : > { %v679_v20 = vsub.f32 %v1691_v21, %v667_v19 }
 0x21e   : > { %v1721_v45 = vpop.eup %1185  ;;  %v692_v60 = vmul.f32 1.442695, %v679_v20 }
 0x21f   : > { %v710_v59 = vsel %vm649_vm1, %v1721_v45, 0.0 }
 0x220   : > { %1187 = vpow2.f32 %v692_v60  ;;  %711 = vadd.xlane.f32.xlu0 %v710_v59  ;;  %v820_v59 = vld [vmem:[#allocation3 + $0x30] sm:$0xff] }
 0x223   : > { %v670_v22 = vpop.xlane.xlu0 %669 }
 0x224   : > { %v680_v44 = vsub.f32 %v1695_v23, %v670_v22  ;;  %v821_v22 = vld [vmem:[#allocation3 + $0x38] sm:$0xff] }
 0x226   : > { %v1188_v24 = vpop.eup %1187  ;;  %v694_v26 = vmul.f32 1.442695, %v680_v44  ;;  %v818_v44 = vld [vmem:[#allocation3 + $0x20] sm:$0xff] }
 0x227   : > { %v713_v27 = vsel %vm649_vm1, %v1188_v24, 0.0 }
 0x228   : > { %1189 = vpow2.f32 %v694_v26  ;;  %714 = vadd.xlane.f32.xlu1 %v713_v27  ;;  %v816_v27 = vld [vmem:[#allocation3 + $0x10] sm:$0xff] }
 0x22b   : > { %v673_v28 = vpop.xlane.xlu1 %672 }
 0x22c   : > { %v681_v21 = vsub.f32 %v1699_v25, %v673_v28  ;;  %v817_v28 = vld [vmem:[#allocation3 + $0x18] sm:$0xff] }
 0x22e   : > { %v1728_v29 = vpop.eup %1189  ;;  %v696_v30 = vmul.f32 1.442695, %v681_v21  ;;  %v831_v21 = vpack.c.bf16 %v817_v28, %v816_v27 }
 0x22f   : > { %v716_v31 = vsel %vm649_vm1, %v1728_v29, 0.0 }
 0x230   : > { %1191 = vpow2.f32 %v696_v30  ;;  %717 = vadd.xlane.f32.xlu2 %v716_v31  ;;  %v814_v30 = vld [vmem:[#allocation3] sm:$0xff]  ;;  %v815_v31 = vld [vmem:[#allocation3 + $0x8] sm:$0xff] }
 0x236   : > { %v1192_v32 = vpop.eup %1191 }
 0x237   : > { %v719_v23 = vsel %vm649_vm1, %v1192_v32, 0.0 }
 0x238   : > { %720 = vadd.xlane.f32.xlu0 %v719_v23  ;;  %v830_v23 = vpack.c.bf16 %v815_v31, %v814_v30 }
 0x241   : > { %791 = vperm.xlu1 %1169, %v1174_v33  }
 0x273   : > { %v700_v35 = vpop.xlane.xlu2 %699 }
 0x274   : > { %1193 = vrcp.f32 %v700_v35 }
 0x27a   : > { %v1194_v37 = vpop.eup %1193 }
 0x27b   : > { %v703_v25 = vpop.xlane.xlu0 %702  ;;  %v730_v39 = vmul.f32 %v1194_v37, %v1703_v43  ;;  %v829_v43 = vld [vmem:[#allocation3 + $0x78] sm:$0xff] }
 0x27c   : > { %1195 = vrcp.f32 %v703_v25 }
 0x282   : > { %v1196_v38 = vpop.eup %1195 }
 0x283   : > { %v731_v46 = vmul.f32 %v1196_v38, %v1710_v54  ;;  %v706_v48 = vpop.xlane.xlu1 %705  ;;  %v837_v54 = vpack.c.bf16 %v829_v43, %v828_v63 }
 0x284   : > { %1197 = vrcp.f32 %v706_v48 }
 0x285   : > { %v738_v47 = vpack.c.bf16 %v731_v46, %v730_v39  ;;  %842 = vmatpush.bf16.msrb.mxu1 %v837_v54 }
 0x287   : > { %1093 = vmatmul.msk.bf16.vlgmr.msrb.gmra.mxu0 %vm649_vm1, %v738_v47 }
 0x289   : > { %843 = vmatpush.bf16.msrb.mxu1 %v836_v2 }
 0x28a   : > { %v1198_v50 = vpop.eup %1197 }
 0x28b   : > { %v709_v49 = vpop.xlane.xlu2 %708  ;;  %v732_v52 = vmul.f32 %v1198_v50, %v1714_v7  ;;  %v822_v7 = vld [vmem:[#allocation3 + $0x40] sm:$0xff] }
 0x28c   : > { %1199 = vrcp.f32 %v709_v49  ;;  %v834_v11 = vpack.c.bf16 %v823_v8, %v822_v7  ;;  %v1175_v7 = vld [vmem:[%s1805_s9] ss:$0 sm:$0xff] }
 0x28d   : > { %844 = vmatpush.bf16.msrb.mxu1 %v835_v6 }
 0x291   : > { %845 = vmatpush.bf16.msrb.mxu1 %v834_v11 }
 0x292   : > { %v1200_v51 = vpop.eup %1199 }
 0x293   : > { %v733_v53 = vmul.f32 %v1200_v51, %v1184_v16  ;;  %v712_v62 = vpop.xlane.xlu0 %711 }
 0x294   : > { %1201 = vrcp.f32 %v712_v62 }
 0x295   : > { %v739_v61 = vpack.c.bf16 %v733_v53, %v732_v52 }
 0x297   : > { %1094 = vmatmul.msk.bf16.gmra.mxu0 %vm649_vm1, %v739_v61 }
 0x29a   : > { %v1202_v9 = vpop.eup %1201 }
 0x29b   : > { %v715_v3 = vpop.xlane.xlu1 %714  ;;  %v734_v12 = vmul.f32 %v1202_v9, %v1721_v45  ;;  %v833_v45 = vpack.c.bf16 %v821_v22, %v820_v59 }
 0x29c   : > { %1203 = vrcp.f32 %v715_v3 }
 0x29d   : > { %846 = vmatpush.bf16.msrb.mxu1 %v833_v45 }
 0x2a2   : > { %v1204_v10 = vpop.eup %1203 }
 0x2a3   : > { %v735_v13 = vmul.f32 %v1204_v10, %v1188_v24  ;;  %v718_v15 = vpop.xlane.xlu2 %717  ;;  %v819_v24 = vld [vmem:[#allocation3 + $0x28] sm:$0xff]  ;;  %v1176_v10 = vld [vmem:[%s1806_s10] ss:$0 sm:$0xff] }
 0x2a4   : > { %1205 = vrcp.f32 %v718_v15  ;;  %v832_v26 = vpack.c.bf16 %v819_v24, %v818_v44 }
 0x2a5   : > { %v740_v14 = vpack.c.bf16 %v735_v13, %v734_v12 }
 0x2a6   : > { %847 = vmatpush.bf16.msrb.mxu1 %v832_v26 }
 0x2a7   : > { %1095 = vmatmul.msk.bf16.gmra.mxu0 %vm649_vm1, %v740_v14 }
 0x2aa   : > { %v1206_v17 = vpop.eup %1205  ;;  %848 = vmatpush.bf16.msrb.mxu1 %v831_v21 }
 0x2ab   : > { %v721_v16 = vpop.xlane.xlu0 %720  ;;  %v736_v19 = vmul.f32 %v1206_v17, %v1728_v29 }
 0x2ac   : > { %1207 = vrcp.f32 %v721_v16 }
 0x2ae   : > { %849 = vmatpush.bf16.msrb.mxu1 %v830_v23 }
 0x2b2   : > { %v1208_v18 = vpop.eup %1207 }
 0x2b3   : > { %v737_v20 = vmul.f32 %v1208_v18, %v1192_v32  ;;  %v792_v32 = vpop.permute.xlu1 %791 }
 0x2b5   : > { %v741_v60 = vpack.c.bf16 %v737_v20, %v736_v19 }
 0x2b7   : > { %1096 = vmatmul.msk.bf16.gmra.mxu0 %vm649_vm1, %v741_v60 }
 0x304   : > { %v767_v29 = vpop.f32.mrf.mxu0 }
 0x305   : > { %v794_v33 = vmul.f32 %v792_v32, %v767_v29 }
 0x307   : > { %v802_v37 = vadd.f32 %v794_v33, %v1558_v41 }
 0x30c   : > { %v769_v34 = vpop.f32.mrf.mxu0 }
 0x30d   : > { %v795_v35 = vmul.f32 %v792_v32, %v769_v34 }
 0x30f   : > { %v803_v25 = vadd.f32 %v795_v35, %v1561_v42 }
 0x311   : > { %v810_v38 = vpack.c.bf16 %v803_v25, %v802_v37 }
 0x313   : > { %850 = vmatmul.bf16.vlgmr.msrb.gmra.mxu1 %v810_v38 }
 0x314   : > { %v772_v39 = vpop.f32.mrf.mxu0 }
 0x315   : > { %v796_v46 = vmul.f32 %v792_v32, %v772_v39 }
 0x317   : > { %v804_v49 = vadd.f32 %v796_v46, %v1598_v57 }
 0x31c   : > { %v774_v47 = vpop.f32.mrf.mxu0 }
 0x31d   : > { %v797_v48 = vmul.f32 %v792_v32, %v774_v47 }
 0x31f   : > { %v805_v50 = vadd.f32 %v797_v48, %v1601_v58 }
 0x321   : > { %v811_v51 = vpack.c.bf16 %v805_v50, %v804_v49 }
 0x323   : > { %855 = vmatmul.bf16.gmra.mxu1 %v811_v51 }
 0x324   : > { %v777_v52 = vpop.f32.mrf.mxu0 }
 0x325   : > { %v798_v53 = vmul.f32 %v792_v32, %v777_v52 }
 0x327   : > { %v806_v63 = vadd.f32 %v798_v53, %v1546_v36 }
 0x32c   : > { %v779_v61 = vpop.f32.mrf.mxu0 }
 0x32d   : > { %v799_v62 = vmul.f32 %v792_v32, %v779_v61 }
 0x32f   : > { %v807_v43 = vadd.f32 %v799_v62, %v1555_v40 }
 0x331   : > { %v812_v0 = vpack.c.bf16 %v807_v43, %v806_v63 }
 0x333   : > { %860 = vmatmul.bf16.gmra.mxu1 %v812_v0 }
 0x334   : > { %v782_v54 = vpop.f32.mrf.mxu0 }
 0x335   : > { %v800_v1 = vmul.f32 %v792_v32, %v782_v54 }
 0x337   : > { %v808_v4 = vadd.f32 %v800_v1, %v1592_v55 }
 0x33c   : > { %v784_v2 = vpop.f32.mrf.mxu0 }
 0x33d   : > { %v801_v3 = vmul.f32 %v792_v32, %v784_v2 }
 0x33f   : > { %v809_v5 = vadd.f32 %v801_v3, %v1595_v56 }
 0x341   : > { %v813_v6 = vpack.c.bf16 %v809_v5, %v808_v4 }
 0x343   : > { %865 = vmatmul.bf16.gmra.mxu1 %v813_v6 }
 0x390   : > { %v851_v8 = vpop.f32.mrf.mxu1 }
 0x391   : > { %v852_v9 = vadd.f32 %v1175_v7, %v851_v8 }
 0x393   : > { %1209 = vtanh.f32 %v852_v9 }
 0x398   : > { %v853_v11 = vpop.f32.mrf.mxu1 }
 0x399   : > { %v1210_v12 = vpop.eup %1209  ;;  %v854_v13 = vadd.f32 %v1175_v7, %v853_v11 }
 0x39a   : > { %v883_v14 = vmul.f32 %v1210_v12, %v1176_v10 }
 0x39b   : > { %1211 = vtanh.f32 %v854_v13 }
 0x39c   : > { %891 = vadd.xlane.f32.xlu2 %v883_v14 }
 0x3a0   : > { %v856_v15 = vpop.f32.mrf.mxu1 }
 0x3a1   : > { %v1212_v16 = vpop.eup %1211  ;;  %v857_v17 = vadd.f32 %v1175_v7, %v856_v15 }
 0x3a2   : > { %v884_v18 = vmul.f32 %v1212_v16, %v1176_v10 }
 0x3a3   : > { %1213 = vtanh.f32 %v857_v17 }
 0x3a4   : > { %893 = vadd.xlane.f32.xlu0 %v884_v18 }
 0x3a8   : > { %v858_v19 = vpop.f32.mrf.mxu1 }
 0x3a9   : > { %v1214_v20 = vpop.eup %1213  ;;  %v859_v60 = vadd.f32 %v1175_v7, %v858_v19 }
 0x3aa   : > { %v885_v59 = vmul.f32 %v1214_v20, %v1176_v10 }
 0x3ab   : > { %1215 = vtanh.f32 %v859_v60 }
 0x3ac   : > { %895 = vadd.xlane.f32.xlu2 %v885_v59 }
 0x3b0   : > { %v861_v22 = vpop.f32.mrf.mxu1 }
 0x3b1   : > { %v1216_v45 = vpop.eup %1215  ;;  %v862_v44 = vadd.f32 %v1175_v7, %v861_v22 }
 0x3b2   : > { %v886_v24 = vmul.f32 %v1216_v45, %v1176_v10 }
 0x3b3   : > { %1217 = vtanh.f32 %v862_v44 }
 0x3b4   : > { %897 = vadd.xlane.f32.xlu0 %v886_v24 }
 0x3b8   : > { %v863_v26 = vpop.f32.mrf.mxu1 }
 0x3b9   : > { %v1218_v27 = vpop.eup %1217  ;;  %v864_v28 = vadd.f32 %v1175_v7, %v863_v26 }
 0x3ba   : > { %v887_v21 = vmul.f32 %v1218_v27, %v1176_v10 }
 0x3bb   : > { %1219 = vtanh.f32 %v864_v28 }
 0x3bc   : > { %899 = vadd.xlane.f32.xlu2 %v887_v21 }
 0x3c0   : > { %v866_v30 = vpop.f32.mrf.mxu1 }
 0x3c1   : > { %v1220_v31 = vpop.eup %1219  ;;  %v867_v23 = vadd.f32 %v1175_v7, %v866_v30 }
 0x3c2   : > { %v888_v29 = vmul.f32 %v1220_v31, %v1176_v10 }
 0x3c3   : > { %1221 = vtanh.f32 %v867_v23 }
 0x3c4   : > { %901 = vadd.xlane.f32.xlu0 %v888_v29 }
 0x3c8   : > { %v868_v32 = vpop.f32.mrf.mxu1 }
 0x3c9   : > { %v1222_v33 = vpop.eup %1221  ;;  %v869_v34 = vadd.f32 %v1175_v7, %v868_v32 }
 0x3ca   : > { %v889_v35 = vmul.f32 %v1222_v33, %v1176_v10 }
 0x3cb   : > { %1223 = vtanh.f32 %v869_v34 }
 0x3cc   : > { %903 = vadd.xlane.f32.xlu2 %v889_v35 }
 0x3d1   : > { %v1224_v25 = vpop.eup %1223 }
 0x3d2   : > { %v890_v37 = vmul.f32 %v1224_v25, %v1176_v10 }
 0x3d4   : > { %905 = vadd.xlane.f32.xlu1 %v890_v37 }
 0x40f   : > { %v892_v38 = vpop.xlane.xlu2 %891 }
 0x417   : > { %v894_v39 = vpop.xlane.xlu0 %893 }
 0x41f   : > { %v896_v46 = vpop.xlane.xlu2 %895 }
 0x427   : > { %v898_v47 = vpop.xlane.xlu0 %897 }
 0x42f   : > { %v900_v48 = vpop.xlane.xlu2 %899 }
 0x430   : > { %v907_v53 = vmax.f32 %v892_v38, %v900_v48 }
 0x437   : > { %v902_v49 = vpop.xlane.xlu0 %901 }
 0x438   : > { %v908_v51 = vmax.f32 %v894_v39, %v902_v49 }
 0x43a   : > { %v911_v63 = vmax.f32 %v907_v53, %v908_v51 }
 0x43f   : > { %v904_v50 = vpop.xlane.xlu2 %903 }
 0x440   : > { %v909_v61 = vmax.f32 %v896_v46, %v904_v50 }
 0x447   : > { %v906_v52 = vpop.xlane.xlu1 %905 }
 0x448   : > { %v910_v62 = vmax.f32 %v898_v47, %v906_v52 }
 0x44a   : > { %v912_v43 = vmax.f32 %v909_v61, %v910_v62 }
 0x44c   : > { %v913_v0 = vmax.f32 %v911_v63, %v912_v43 }
 0x44e   : > { %v914_v54 = vrot.slane %v913_v0, 4 }
 0x450   : > { %v915_v1 = vmax.f32 %v913_v0, %v914_v54 }
 0x452   : > { %v916_v2 = vrot.slane %v915_v1, 2 }
 0x454   : > { %v917_v3 = vmax.f32 %v915_v1, %v916_v2 }
 0x456   : > { %v918_v4 = vrot.slane %v917_v3, 1 }
 0x458   : > { %v919_v5 = vmax.f32 %v917_v3, %v918_v4 }
 0x45a   : > { %v920_v6 = vsub.f32 %v892_v38, %v919_v5  ;;  %v921_v7 = vsub.f32 %v894_v39, %v919_v5  ;;  %v922_v8 = vsub.f32 %v896_v46, %v919_v5  ;;  %v923_v9 = vsub.f32 %v898_v47, %v919_v5 }
 0x45b   : > { %v924_v12 = vsub.f32 %v900_v48, %v919_v5  ;;  %v925_v14 = vsub.f32 %v902_v49, %v919_v5  ;;  %v926_v16 = vsub.f32 %v904_v50, %v919_v5  ;;  %v927_v18 = vsub.f32 %v906_v52, %v919_v5 }
 0x45c   : > { %v928_v10 = vmul.f32 1.442695, %v920_v6  ;;  %v930_v11 = vmul.f32 1.442695, %v921_v7  ;;  %v932_v13 = vmul.f32 1.442695, %v922_v8 }
 0x45d   : > { %v934_v15 = vmul.f32 1.442695, %v923_v9  ;;  %v936_v17 = vmul.f32 1.442695, %v924_v12  ;;  %v938_v19 = vmul.f32 1.442695, %v925_v14 }
 0x45e   : > { %1225 = vpow2.f32 %v928_v10  ;;  %v940_v59 = vmul.f32 1.442695, %v926_v16  ;;  %v942_v44 = vmul.f32 1.442695, %v927_v18 }
 0x45f   : > { %1227 = vpow2.f32 %v930_v11 }
 0x460   : > { %1229 = vpow2.f32 %v932_v13 }
 0x461   : > { %1231 = vpow2.f32 %v934_v15 }
 0x462   : > { %1233 = vpow2.f32 %v936_v17 }
 0x463   : > { %1235 = vpow2.f32 %v938_v19 }
 0x464   : > { %v1226_v20 = vpop.eup %1225  ;;  %1237 = vpow2.f32 %v940_v59 }
 0x465   : > { %v1228_v60 = vpop.eup %1227  ;;  %1239 = vpow2.f32 %v942_v44 }
 0x466   : > { %v944_v22 = vadd.f32 %v1228_v60, %v1226_v20  ;;  %v1230_v45 = vpop.eup %1229 }
 0x467   : > { %v1232_v26 = vpop.eup %1231 }
 0x468   : > { %v945_v24 = vadd.f32 %v1230_v45, %v944_v22  ;;  %v1234_v28 = vpop.eup %1233 }
 0x469   : > { %v1236_v30 = vpop.eup %1235 }
 0x46a   : > { %v946_v27 = vadd.f32 %v1232_v26, %v945_v24  ;;  %v1238_v23 = vpop.eup %1237 }
 0x46b   : > { %v1240_v32 = vpop.eup %1239 }
 0x46c   : > { %v947_v21 = vadd.f32 %v1234_v28, %v946_v27 }
 0x46e   : > { %v948_v31 = vadd.f32 %v1236_v30, %v947_v21 }
 0x470   : > { %v949_v29 = vadd.f32 %v1238_v23, %v948_v31 }
 0x472   : > { %v950_v33 = vadd.f32 %v1240_v32, %v949_v29 }
 0x474   : > { %v951_v34 = vrot.slane %v950_v33, 4 }
 0x476   : > { %v952_v35 = vadd.f32 %v951_v34, %v950_v33 }
 0x478   : > { %v953_v25 = vrot.slane %v952_v35, 2 }
 0x47a   : > { %v954_v37 = vadd.f32 %v953_v25, %v952_v35 }
 0x47c   : > { %v955_v38 = vrot.slane %v954_v37, 1 }
 0x47e   : > { %v956_v39 = vadd.f32 %v955_v38, %v954_v37 }
 0x480   : > { %1241 = vrcp.f32 %v956_v39  ;;  %v968_v49 = vand.u32 2147483648, %v956_v39  ;;  %v966_v51 = vand.u32 2147483647, %v956_v39  ;;  %vm962_vm3 = vweird.f32 %v956_v39 }
 0x482   : > { %v969_v53 = vor.u32 1.1754944e-38, %v968_v49  ;;  %vm967_vm5 = vcmp.eq.f32.partialorder %v966_v51, 8.507059e+37 }
 0x486   : > { %v1242_v46 = vpop.eup %1241 }
 0x487   : > { %v958_v47 = vmul.f32 %v1242_v46, %v956_v39  ;;  %vm963_vm2 = vweird.f32 %v1242_v46 }
 0x488   : > { %vm964_vm4 = vmor %vm962_vm3, %vm963_vm2 }
 0x489   : > { %v959_v48 = vsub.f32 1.0, %v958_v47 }
 0x48b   : > { %v960_v50 = vmul.f32 %v1242_v46, %v959_v48 }
 0x48d   : > { %v961_v52 = vadd.f32 %v1242_v46, %v960_v50 }
 0x48f   : > { %v965_v61 = vsel %vm964_vm4, %v1242_v46, %v961_v52 }
 0x490   : > { %v970_v62 = vsel %vm967_vm5, %v969_v53, %v965_v61 }
 0x491   : > { %v971_v63 = vmul.f32 %v1226_v20, %v970_v62  ;;  %v972_v43 = vmul.f32 %v1228_v60, %v970_v62  ;;  %v973_v0 = vmul.f32 %v1230_v45, %v970_v62  ;;  %v974_v54 = vmul.f32 %v1232_v26, %v970_v62 }
 0x492   : > { %v975_v3 = vmul.f32 %v1234_v28, %v970_v62  ;;  %v976_v6 = vmul.f32 %v1236_v30, %v970_v62  ;;  %v977_v9 = vmul.f32 %v1238_v23, %v970_v62  ;;  %v978_v12 = vmul.f32 %v1240_v32, %v970_v62 }
 0x493   : > { %v979_v1 = vmul.f32 %v971_v63, %v1558_v41  ;;  %v980_v2 = vmul.f32 %v972_v43, %v1561_v42  ;;  %v981_v4 = vmul.f32 %v973_v0, %v1598_v57  ;;  %v982_v7 = vmul.f32 %v974_v54, %v1601_v58 }
 0x494   : > { %v983_v10 = vmul.f32 %v975_v3, %v1546_v36  ;;  %v984_v13 = vmul.f32 %v976_v6, %v1555_v40  ;;  %v985_v42 = vmul.f32 %v977_v9, %v1592_v55  ;;  %v986_v57 = vmul.f32 %v978_v12, %v1595_v56 }
 0x495   : > { %v987_v5 = vadd.f32 %v980_v2, %v979_v1 }
 0x497   : > { %v988_v8 = vadd.f32 %v987_v5, %v981_v4 }
 0x499   : > { %v989_v11 = vadd.f32 %v988_v8, %v982_v7 }
 0x49b   : > { %v990_v41 = vadd.f32 %v989_v11, %v983_v10 }
 0x49d   : > { %v991_v14 = vadd.f32 %v990_v41, %v984_v13 }
 0x49f   : > { %v992_v15 = vadd.f32 %v991_v14, %v985_v42 }
 0x4a1   : > { %v993_v16 = vadd.f32 %v992_v15, %v986_v57 }
 0x4a3   : > { %v994_v17 = vrot.slane %v993_v16, 4 }
 0x4a5   : > { %v995_v58 = vadd.f32 %v994_v17, %v993_v16 }
 0x4a7   : > { %v996_v18 = vrot.slane %v995_v58, 2 }
 0x4a9   : > { %v997_v36 = vadd.f32 %v996_v18, %v995_v58 }
 0x4ab   : > { %v998_v40 = vrot.slane %v997_v36, 1 }
 0x4ad   : > { %v999_v55 = vadd.f32 %v998_v40, %v997_v36 }
 0x4af   : > { %1000 = vst [vmem:[%s397_s18] sm:$0x1] %v999_v55 }
 0x4b0   : > { %1300 = shalt.err (!%p1297_p8)
}
 0x4b1   : > { %1120 = dma.vmem_to_hbm [thread:$0]  (%p1446_p5), %s1013_s23, 16, %s1015_s30, %s1002_s25  }
 0x4b2 PF: > { %p1132_p9 = scmp.ge.s32.totalorder %s1339_s22, 2  ;;  %s1026_s15 = sand.u32 1, %s1327_s19  }
 0x4b3   : > { %s1027_s17 = scalar_lea.sflag [#allocation5], %s1026_s15 }
 0x4b4   : > { %p1127_p10 = pnand %p1132_p9, %p1450_p6 }
 0x4b6   : > { %p1128_p11 = pneg %p1127_p10 }
 0x4b8   : > { %1322 = dma.done.wait (%p1128_p11), %s1027_s17, 16  }
 0x4b9   : > { %1324 = vsyncadd (%p1128_p11), %s1027_s17, 4294967280  ;;  %p24_p12 = scmp.ge.s32.totalorder %s1433_s24, 4   ;;  %s1812_s19 = smov %s1331_s20 }
 0x4ba   : > { %s1813_s20 = smov %s1335_s21  ;;  %s1814_s21 = smov %s1444_s27 }
 0x4bb   : > { %s1815_s22 = smov %s1433_s24  ;;  %26 = sbr.rel (!%p24_p12) target bundleno = 7 (0x7), region = 104 }
 0x4c0   :  { %1032 = vsyncpa [#allocation4], 1 }
 0x4c1   :  { %1034 = vsyncpa [#allocation4 + $0x1], 1 }
 0x4c2   :  { %1035 = vsyncpa [#allocation5], 1 }
 0x4c3   :  { %1037 = vsyncpa [#allocation5 + $0x1], 1 }

</bundles_post_ra>
